<compile_context>
chip_gen: v5e
topology: v5e:2x2
jax: 0.10.0
libtpu: 0.0.40
codegen_flags: <defaults>
</compile_context>

<pallas_src>
import functools
import math

import jax
import jax.numpy as jnp
from jax.experimental import pallas as pl
from jax.experimental.pallas import tpu as pltpu


def _round_up(x, m):
    return ((x + m - 1) // m) * m


def _vmem_capacity_bytes():
    try:
        return int(pltpu.get_tpu_info().vmem_capacity_bytes)
    except Exception:
        return 64 * 1024 * 1024  # conservative fallback (v7x-sized VMEM)


def _gcn_low_kernel(adj_ref, feat_ref, w_ref, b_ref, o_ref, x_buf, acc_ref=None,
                    *, tm, tk, n_pad, nj, hops, multi_j, adj_dynamic_index,
                    dot_dtype, state_dtype):
    """Fused GCN_Low forward.

    Grid = (hops, n_pad // tm, n_pad // tk):
      k : propagation hop (sequential dependency)
      i : output row tile
      j : reduction (adjacency column) tile
    x_buf is a (2*n_pad, f_pad) VMEM ping-pong buffer holding the propagation
    state: hop k reads parity k % 2 and writes parity (k + 1) % 2.  Parity 0
    is seeded with the raw features during (k == 0, i == 0).
    """
    k = pl.program_id(0)
    i = pl.program_id(1)
    j = pl.program_id(2)

    # --- Seed parity-0 with the features, exactly once per column tile. ---
    @pl.when(jnp.logical_and(k == 0, i == 0))
    def _():
        seed_start = pl.multiple_of(j * tk, tk)
        x_buf[pl.ds(seed_start, tk), :] = feat_ref[...].astype(state_dtype)

    # --- Current adjacency tile (VMEM-resident full array or streamed). ---
    if adj_dynamic_index:
        a_blk = adj_ref[i * nj + j]          # resident: slice tile from VMEM
    else:
        a_blk = adj_ref[0]                   # streamed (or single tile)

    # --- Propagation matmul for this (i, j) tile of hop k. ---
    read_start = pl.multiple_of((k % 2) * n_pad + j * tk, tk)
    x_src = x_buf[pl.ds(read_start, tk), :]
    part = jnp.dot(a_blk.astype(dot_dtype), x_src.astype(dot_dtype),
                   preferred_element_type=jnp.float32)

    if multi_j:
        @pl.when(j == 0)
        def _():
            acc_ref[...] = jnp.zeros(acc_ref.shape, acc_ref.dtype)
        acc_ref[...] += part
        tile_done = j == nj - 1

        def x_new():
            return acc_ref[...]
    else:
        tile_done = None

        def x_new():
            return part

    def _and_done(cond):
        return cond if tile_done is None else jnp.logical_and(cond, tile_done)

    # --- Stash this hop's rows for the next hop (opposite parity half). ---
    if hops > 1:
        @pl.when(_and_done(k < hops - 1))
        def _():
            write_start = pl.multiple_of(((k + 1) % 2) * n_pad + i * tm, tm)
            x_buf[pl.ds(write_start, tm), :] = x_new().astype(state_dtype)

    # --- Fused epilogue on the LAST hop only: (A^hops X) @ (0.5^hops W) + b.
    @pl.when(_and_done(k == hops - 1))
    def _():
        y = jnp.dot(x_new(), w_ref[...], preferred_element_type=jnp.float32)
        o_ref[...] = (y + b_ref[...]).astype(o_ref.dtype)


def gcn_low_forward(feature, adj_self, weight, bias, low_k, *,
                    adj_dtype=jnp.bfloat16, state_dtype=jnp.float32,
                    _force_tile=None, _force_adj_stream=False):
    """Pallas implementation of GCN_Low.forward (dense adj; torch.spmm == mm).

    adj_dtype=bf16 is exactly lossless for 0/1 adjacencies; pass float32 for
    arbitrary-valued adjacencies.  state_dtype=bf16 is an optional (lossy)
    speed/VMEM knob; default keeps the propagation state in f32.
    """
    N, F = feature.shape
    F2, E = weight.shape
    assert F == F2 and adj_self.shape == (N, N)
    hops = max(int(low_k), 1)

    LANE = 128
    f32 = jnp.float32
    f_pad = _round_up(F, LANE)
    e_pad = _round_up(E, LANE)
    n_min = _round_up(N, LANE)

    adj_isz = jnp.dtype(adj_dtype).itemsize
    state_isz = jnp.dtype(state_dtype).itemsize

    # Generation-aware sizing: v5e/v6e (128 MiB VMEM) -> big tiles & ~100 MiB
    # scoped limit; v7x (64 MiB) -> 512 tiles & ~54 MiB limit.
    vmem_cap = _vmem_capacity_bytes()
    vmem_budget = min(int(vmem_cap * 0.85), 100 * 1024 * 1024)
    tile_cap = _force_tile or (1024 if vmem_cap >= 96 * 1024 * 1024 else 512)

    if n_min <= tile_cap:
        tm = tk = n_pad = n_min               # single row/col tile
    else:
        tm = tk = tile_cap                    # pad N UP to the target tile
        n_pad = _round_up(N, tile_cap)        # (never fall back to 128 tiles)

    ni, nj = n_pad // tm, n_pad // tk
    n_tiles = ni * nj
    multi_j = nj > 1

    # Conservative VMEM accounting (inputs/outputs double-buffered + scratch).
    fixed_vmem = (2 * n_pad * f_pad * state_isz          # ping-pong state
                  + 2 * tk * f_pad * 4                   # feature blocks
                  + 2 * f_pad * e_pad * 4                # weight (resident)
                  + 2 * 8 * e_pad * 4                    # bias
                  + 2 * tm * e_pad * 4                   # output block
                  + (tm * f_pad * 4 if multi_j else 0))  # f32 accumulator
    adj_resident_vmem = 2 * n_tiles * tm * tk * adj_isz
    adj_stream_vmem = 2 * tm * tk * adj_isz
    adj_resident = (not _force_adj_stream) and (
        fixed_vmem + adj_resident_vmem <= vmem_budget)
    adj_vmem = adj_resident_vmem if adj_resident else adj_stream_vmem
    vmem_limit = max(32 << 20, min(vmem_budget, fixed_vmem + adj_vmem + (16 << 20)))
    # TODO(synk): x_buf keeps the full (2*n_pad, f_pad) state VMEM-resident,
    # capping the node count; huge graphs need a per-hop spill or column strips.

    scale = 0.5 ** hops  # power of two -> folding into W is exact

    # Zero-pad to lane-dense / tile-divisible shapes (zeros are neutral), and
    # lay adjacency out as contiguous (ni*nj, tm, tk) tiles.
    adj_p = jnp.zeros((n_pad, n_pad), f32).at[:N, :N].set(adj_self.astype(f32))
    adj_t = (adj_p.reshape(ni, tm, nj, tk).transpose(0, 2, 1, 3)
             .reshape(n_tiles, tm, tk).astype(adj_dtype))
    feat_p = jnp.zeros((n_pad, f_pad), f32).at[:N, :F].set(feature.astype(f32))
    w_p = jnp.zeros((f_pad, e_pad), f32).at[:F, :E].set(weight.astype(f32) * scale)
    b_p = jnp.zeros((1, e_pad), f32)
    if bias is not None:
        b_p = b_p.at[0, :E].set(bias.astype(f32))

    if adj_resident:
        # Whole tiled adjacency resident in VMEM, DMA'd exactly once.
        adj_spec = pl.BlockSpec((n_tiles, tm, tk), lambda k, i, j: (0, 0, 0))
    else:
        # Streamed: one contiguous (tm, tk) tile per grid step.
        adj_spec = pl.BlockSpec((1, tm, tk), lambda k, i, j: (i * nj + j, 0, 0))

    # Feature is only meaningful (and only re-DMA'd) during the hop-0 /
    # row-tile-0 seeding pass; afterwards the block index collapses to 0.
    feat_spec = pl.BlockSpec(
        (tk, f_pad),
        lambda k, i, j: (jnp.where(jnp.logical_and(k == 0, i == 0), j, 0), 0))
    # Output block index only advances on the last hop -> no early write-backs.
    out_spec = pl.BlockSpec(
        (tm, e_pad), lambda k, i, j: (jnp.where(k == hops - 1, i, 0), 0))

    dot_dtype = (jnp.bfloat16
                 if (jnp.dtype(adj_dtype) == jnp.dtype(jnp.bfloat16)
                     and jnp.dtype(state_dtype) == jnp.dtype(jnp.bfloat16))
                 else f32)

    scratch = [pltpu.VMEM((2 * n_pad, f_pad), state_dtype)]   # ping-pong state
    if multi_j:
        scratch.append(pltpu.VMEM((tm, f_pad), f32))           # f32 accumulator

    kernel = functools.partial(
        _gcn_low_kernel, tm=tm, tk=tk, n_pad=n_pad, nj=nj, hops=hops,
        multi_j=multi_j, adj_dynamic_index=(adj_resident and n_tiles > 1),
        dot_dtype=dot_dtype, state_dtype=state_dtype)

    flops = 2 * hops * n_pad * n_pad * f_pad + 2 * n_pad * f_pad * e_pad
    adj_hbm = n_pad * n_pad * adj_isz * (1 if adj_resident else hops)
    bytes_accessed = (adj_hbm + n_pad * f_pad * 4 + f_pad * e_pad * 4
                      + e_pad * 4 + n_pad * e_pad * 4)

    out_p = pl.pallas_call(
        kernel,
        out_shape=jax.ShapeDtypeStruct((n_pad, e_pad), f32),
        grid_spec=pltpu.PrefetchScalarGridSpec(
            num_scalar_prefetch=0,
            grid=(hops, ni, nj),
            in_specs=[
                adj_spec,                                            # adjacency
                feat_spec,                                           # features
                pl.BlockSpec((f_pad, e_pad), lambda k, i, j: (0, 0)),  # weight
                pl.BlockSpec((1, e_pad), lambda k, i, j: (0, 0)),      # bias
            ],
            out_specs=out_spec,
            scratch_shapes=scratch,
        ),
        compiler_params=pltpu.CompilerParams(
            # hops are sequentially dependent and row/col tiles share the
            # per-core ping-pong scratch -> keep all axes sequential.
            dimension_semantics=("arbitrary", "arbitrary", "arbitrary"),
            vmem_limit_bytes=int(vmem_limit),
        ),
        cost_estimate=pl.CostEstimate(
            flops=int(flops), transcendentals=0,
            bytes_accessed=int(bytes_accessed)),
    )(adj_t, feat_p, w_p, b_p)

    return out_p[:N, :E]


def gcn_low_reference(feature, adj_self, weight, bias, low_k):
    conv = 0.5 * adj_self
    out = conv @ feature
    for _ in range(low_k - 1):
        out = conv @ out
    out = out @ weight
    if bias is not None:
        out = out + bias
    return out


def _run_case(key, N, F, E, low_k, use_bias, **kw):
    k_feat, k_adj, k_w, k_b = jax.random.split(key, 4)
    feature = jax.random.normal(k_feat, (N, F), dtype=jnp.float32)
    # symmetric 0/1 adjacency with self loops (dense; torch.spmm here is a mm)
    adj = (jax.random.uniform(k_adj, (N, N), dtype=jnp.float32) > 0.7).astype(jnp.float32)
    adj_self = jnp.minimum(adj + adj.T + jnp.eye(N, dtype=jnp.float32), 1.0)
    # reset_parameters(): uniform(-stdv, stdv), stdv = 1/sqrt(embedding_size)
    stdv = 1.0 / math.sqrt(E)
    weight = jax.random.uniform(k_w, (F, E), minval=-stdv, maxval=stdv,
                                dtype=jnp.float32)
    bias = (jax.random.uniform(k_b, (E,), minval=-stdv, maxval=stdv,
                               dtype=jnp.float32) if use_bias else None)

    out = jax.block_until_ready(
        gcn_low_forward(feature, adj_self, weight, bias, low_k, **kw))
    ref = gcn_low_reference(feature, adj_self, weight, bias, low_k)
    assert out.shape == (N, E)
    err = float(jnp.max(jnp.abs(out - ref)))
    assert jnp.allclose(out, ref, atol=1e-3, rtol=1e-4), f"mismatch, max abs err={err}"
    return out


if __name__ == "__main__":
    key = jax.random.PRNGKey(0)
    k0, k1, k2 = jax.random.split(key, 3)

    # Small shapes consistent with the module (N nodes, F features, E embed).
    # 1) tiny graph: single-tile path, VMEM-resident adjacency.
    _run_case(k0, N=16, F=8, E=32, low_k=3, use_bias=True)
    # 2) multi-tile path (forced 128 tiles): resident adj sliced in-kernel,
    #    reduction accumulator, gated epilogue.
    _run_case(k1, N=256, F=8, E=32, low_k=3, use_bias=True, _force_tile=128)
    # 3) fully streamed adjacency path, no bias.
    _run_case(k2, N=256, F=8, E=32, low_k=2, use_bias=False,
              _force_tile=128, _force_adj_stream=True)

    print("KERNEL_OK")
</pallas_src>

<mosaic_0001>
module attributes {stable_mosaic.version = 11 : i64} {
  func.func @_gcn_low_kernel(%arg0: i32, %arg1: i32, %arg2: i32, %arg3: memref<1x128x128xbf16, #tpu.memory_space<vmem>>, %arg4: memref<128x128xf32, #tpu.memory_space<vmem>>, %arg5: memref<128x128xf32, #tpu.memory_space<vmem>>, %arg6: memref<1x128xf32, #tpu.memory_space<vmem>>, %arg7: memref<128x128xf32, #tpu.memory_space<vmem>>, %arg8: memref<256x128xf32, #tpu.memory_space<vmem>>) attributes {dimension_semantics = [#tpu.dimension_semantics<arbitrary>, #tpu.dimension_semantics<arbitrary>, #tpu.dimension_semantics<arbitrary>], iteration_bounds = array<i64: 3, 1, 1>, scalar_prefetch = 0 : i64, scratch_operands = 1 : i64, tpu.core_type = #tpu.core_type<tc>, window_params = [{pipeline_mode = #tpu.pipeline_mode<synchronous>, transform_indices = @transform_0, window_bounds = array<i64: 1, 128, 128>}, {transform_indices = @transform_1, window_bounds = array<i64: 128, 128>}, {pipeline_mode = #tpu.pipeline_mode<synchronous>, transform_indices = @transform_2, window_bounds = array<i64: 128, 128>}, {pipeline_mode = #tpu.pipeline_mode<synchronous>, transform_indices = @transform_3, window_bounds = array<i64: 1, 128>}, {transform_indices = @transform_4, window_bounds = array<i64: 128, 128>}]} {
    %c0_i32 = arith.constant 0 : i32
    %0 = arith.cmpi eq, %arg0, %c0_i32 : i32
    %c0_i32_0 = arith.constant 0 : i32
    %1 = arith.cmpi eq, %arg1, %c0_i32_0 : i32
    %2 = arith.andi %0, %1 : i1
    %3 = arith.extui %2 : i1 to i32
    %c0_i32_1 = arith.constant 0 : i32
    %4 = arith.cmpi ne, %3, %c0_i32_1 : i32
    scf.if %4 {
      %c128_i32_14 = arith.constant 128 : i32
      %31 = arith.muli %arg2, %c128_i32_14 : i32
      %32 = tpu.assume_multiple %31, 128 : i32
      %c0_15 = arith.constant 0 : index
      %c0_16 = arith.constant 0 : index
      %33 = vector.load %arg4[%c0_15, %c0_16] : memref<128x128xf32, #tpu.memory_space<vmem>>, vector<128x128xf32>
      %34 = arith.index_cast %32 : i32 to index
      %c0_17 = arith.constant 0 : index
      %35 = vector.load %arg8[%34, %c0_17] : memref<256x128xf32, #tpu.memory_space<vmem>>, vector<128x128xf32>
      tpu.vector_store %arg8[%34, %c0_17], %33 {strides = array<i32>} : memref<256x128xf32, #tpu.memory_space<vmem>>, vector<128x128xf32>,
    } else {
    }
    %c0 = arith.constant 0 : index
    %c0_2 = arith.constant 0 : index
    %c0_3 = arith.constant 0 : index
    %5 = vector.load %arg3[%c0, %c0_2, %c0_3] : memref<1x128x128xbf16, #tpu.memory_space<vmem>>, vector<1x128x128xbf16>
    %6 = vector.shape_cast %5 : vector<1x128x128xbf16> to vector<128x128xbf16>
    %c2_i32 = arith.constant 2 : i32
    %c0_i32_4 = arith.constant 0 : i32
    %7 = arith.cmpi eq, %c2_i32, %c0_i32_4 : i32
    %c1_i32 = arith.constant 1 : i32
    %8 = arith.select %7, %c1_i32, %c2_i32 : i32
    %9 = arith.remsi %arg0, %8 : i32
    %c0_i32_5 = arith.constant 0 : i32
    %10 = arith.cmpi ne, %9, %c0_i32_5 : i32
    %c0_i32_6 = arith.constant 0 : i32
    %11 = arith.cmpi slt, %9, %c0_i32_6 : i32
    %c0_i32_7 = arith.constant 0 : i32
    %12 = arith.cmpi slt, %8, %c0_i32_7 : i32
    %13 = arith.xori %11, %12 : i1
    %14 = arith.andi %13, %10 : i1
    %15 = arith.addi %9, %8 : i32
    %16 = arith.select %14, %15, %9 : i32
    %c128_i32 = arith.constant 128 : i32
    %17 = arith.muli %16, %c128_i32 : i32
    %c128_i32_8 = arith.constant 128 : i32
    %18 = arith.muli %arg2, %c128_i32_8 : i32
    %19 = arith.addi %17, %18 : i32
    %20 = tpu.assume_multiple %19, 128 : i32
    %21 = arith.index_cast %20 : i32 to index
    %c0_9 = arith.constant 0 : index
    %22 = vector.load %arg8[%21, %c0_9] : memref<256x128xf32, #tpu.memory_space<vmem>>, vector<128x128xf32>
    %23 = arith.extf %6 : vector<128x128xbf16> to vector<128x128xf32>
    %cst = arith.constant dense<0.000000e+00> : vector<128x128xf32>
    %24 = tpu.matmul %23, %22, %cst {dimension_numbers = #tpu.dot_dimension_numbers<[1], [0], [0], [1], [0, 0, 1, 1], [], []>} : vector<128x128xf32>, vector<128x128xf32>, vector<128x128xf32> -> vector<128x128xf32>
    %c2_i32_10 = arith.constant 2 : i32
    %25 = arith.cmpi slt, %arg0, %c2_i32_10 : i32
    %26 = arith.extui %25 : i1 to i32
    %c0_i32_11 = arith.constant 0 : i32
    %27 = arith.cmpi ne, %26, %c0_i32_11 : i32
    scf.if %27 {
      %c1_i32_14 = arith.constant 1 : i32
      %31 = arith.addi %arg0, %c1_i32_14 : i32
      %c2_i32_15 = arith.constant 2 : i32
      %c0_i32_16 = arith.constant 0 : i32
      %32 = arith.cmpi eq, %c2_i32_15, %c0_i32_16 : i32
      %c1_i32_17 = arith.constant 1 : i32
      %33 = arith.select %32, %c1_i32_17, %c2_i32_15 : i32
      %34 = arith.remsi %31, %33 : i32
      %c0_i32_18 = arith.constant 0 : i32
      %35 = arith.cmpi ne, %34, %c0_i32_18 : i32
      %c0_i32_19 = arith.constant 0 : i32
      %36 = arith.cmpi slt, %34, %c0_i32_19 : i32
      %c0_i32_20 = arith.constant 0 : i32
      %37 = arith.cmpi slt, %33, %c0_i32_20 : i32
      %38 = arith.xori %36, %37 : i1
      %39 = arith.andi %38, %35 : i1
      %40 = arith.addi %34, %33 : i32
      %41 = arith.select %39, %40, %34 : i32
      %c128_i32_21 = arith.constant 128 : i32
      %42 = arith.muli %41, %c128_i32_21 : i32
      %c128_i32_22 = arith.constant 128 : i32
      %43 = arith.muli %arg1, %c128_i32_22 : i32
      %44 = arith.addi %42, %43 : i32
      %45 = tpu.assume_multiple %44, 128 : i32
      %46 = arith.index_cast %45 : i32 to index
      %c0_23 = arith.constant 0 : index
      %47 = vector.load %arg8[%46, %c0_23] : memref<256x128xf32, #tpu.memory_space<vmem>>, vector<128x128xf32>
      tpu.vector_store %arg8[%46, %c0_23], %24 {strides = array<i32>} : memref<256x128xf32, #tpu.memory_space<vmem>>, vector<128x128xf32>,
    } else {
    }
    %c2_i32_12 = arith.constant 2 : i32
    %28 = arith.cmpi eq, %arg0, %c2_i32_12 : i32
    %29 = arith.extui %28 : i1 to i32
    %c0_i32_13 = arith.constant 0 : i32
    %30 = arith.cmpi ne, %29, %c0_i32_13 : i32
    scf.if %30 {
      %c0_14 = arith.constant 0 : index
      %c0_15 = arith.constant 0 : index
      %31 = vector.load %arg5[%c0_14, %c0_15] : memref<128x128xf32, #tpu.memory_space<vmem>>, vector<128x128xf32>
      %cst_16 = arith.constant dense<0.000000e+00> : vector<128x128xf32>
      %32 = tpu.matmul %24, %31, %cst_16 {dimension_numbers = #tpu.dot_dimension_numbers<[1], [0], [0], [1], [0, 0, 1, 1], [], []>} : vector<128x128xf32>, vector<128x128xf32>, vector<128x128xf32> -> vector<128x128xf32>
      %c0_17 = arith.constant 0 : index
      %c0_18 = arith.constant 0 : index
      %33 = vector.load %arg6[%c0_17, %c0_18] : memref<1x128xf32, #tpu.memory_space<vmem>>, vector<1x128xf32>
      %34 = vector.broadcast %33 : vector<1x128xf32> to vector<128x128xf32>
      %35 = arith.addf %32, %34 : vector<128x128xf32>
      %c0_19 = arith.constant 0 : index
      %c0_20 = arith.constant 0 : index
      %36 = vector.load %arg7[%c0_19, %c0_20] : memref<128x128xf32, #tpu.memory_space<vmem>>, vector<128x128xf32>
      tpu.vector_store %arg7[%c0_19, %c0_20], %35 {strides = array<i32>} : memref<128x128xf32, #tpu.memory_space<vmem>>, vector<128x128xf32>,
    } else {
    }
    return
  }
  func.func @transform_0(%arg0: i32, %arg1: i32, %arg2: i32) -> (i32, i32, i32) {
    %c0_i32 = arith.constant 0 : i32
    %c0_i32_0 = arith.constant 0 : i32
    %c0_i32_1 = arith.constant 0 : i32
    %c0_i32_2 = arith.constant 0 : i32
    return %c0_i32, %c0_i32_0, %c0_i32_1 : i32, i32, i32
  }
  func.func @transform_1(%arg0: i32, %arg1: i32, %arg2: i32) -> (i32, i32) {
    %c0_i32 = arith.constant 0 : i32
    %0 = arith.cmpi eq, %arg0, %c0_i32 : i32
    %c0_i32_0 = arith.constant 0 : i32
    %1 = arith.cmpi eq, %arg1, %c0_i32_0 : i32
    %2 = arith.andi %0, %1 : i1
    %c0_i32_1 = arith.constant 0 : i32
    %3 = arith.select %2, %arg2, %c0_i32_1 : i32
    %c0_i32_2 = arith.constant 0 : i32
    %c0_i32_3 = arith.constant 0 : i32
    return %3, %c0_i32_2 : i32, i32
  }
  func.func @transform_2(%arg0: i32, %arg1: i32, %arg2: i32) -> (i32, i32) {
    %c0_i32 = arith.constant 0 : i32
    %c0_i32_0 = arith.constant 0 : i32
    %c0_i32_1 = arith.constant 0 : i32
    return %c0_i32, %c0_i32_0 : i32, i32
  }
  func.func @transform_3(%arg0: i32, %arg1: i32, %arg2: i32) -> (i32, i32) {
    %c0_i32 = arith.constant 0 : i32
    %c0_i32_0 = arith.constant 0 : i32
    %c0_i32_1 = arith.constant 0 : i32
    return %c0_i32, %c0_i32_0 : i32, i32
  }
  func.func @transform_4(%arg0: i32, %arg1: i32, %arg2: i32) -> (i32, i32) {
    %c2_i32 = arith.constant 2 : i32
    %0 = arith.cmpi eq, %arg0, %c2_i32 : i32
    %c0_i32 = arith.constant 0 : i32
    %1 = arith.select %0, %arg1, %c0_i32 : i32
    %c0_i32_0 = arith.constant 0 : i32
    %c0_i32_1 = arith.constant 0 : i32
    return %1, %c0_i32_0 : i32, i32
  }
}

</mosaic_0001>

<bundles_post_ra>
// kernel: tpu_custom_call.1
= control target key start
LH: loop header
LB: loop body
LE: loop exit
PB: predicated region body
PF: predicated region fallthrough
CT: control target
= control target key end

     0   :  { %9 = vsyncpa [#allocation4], 0  ;;  %s1355_s0 = inlined_call_operand.hbm [shape: bf16[1,128,128], index: 0, kind: input, shape index: {}]   ;;  %s1356_s1 = inlined_call_operand.hbm [shape: f32[128,128], index: 1, kind: input, shape index: {}]   ;;  %s1357_s2 = inlined_call_operand.hbm [shape: f32[128,128], index: 2, kind: input, shape index: {}]   ;;  %s1358_s3 = inlined_call_operand.vmem [shape: f32[1,128], index: 3, kind: input, shape index: {}]   ;;  %s1359_s4 = inlined_call_operand.hbm [shape: f32[128,128], index: 4, kind: output, shape index: {}]  }
   0x1   :  { %10 = vsyncpa [#allocation7], 0 }
   0x2   :  { %12 = vsyncpa [#allocation7 + $0x1], 0 }
   0x3   :  { %13 = vsyncpa [#allocation5], 0 }
   0x4   :  { %15 = vsyncpa [#allocation5 + $0x1], 0  ;;  %s1179_s15 = smov 0   ;;  %s1181_s16 = smov 0  }
   0x5   :  { %s1183_s17 = smov 0  }
   0x6 LB: > { %s199_s20 = sshll.u32 %s1357_s2, 4  ;;  %s1198_s21 = sadd.s32 4294967295, %s1142_s17   ;;  %s1142_s17 = sphi %s1183_s17, %s21_s17   ;;  %s1138_s16 = sphi %s1181_s16, %s1363_s16   ;;  %s1134_s15 = sphi %s1179_s15, %s1362_s15   ;;  %s200_s20 = int_to_ptr.hbm [resolvable:$true] %s199_s20 }
   0x7   : > { %s743_s22 = sadd.s32 4294967294, %s1142_s17   ;;  %p746_p0 = scmp.ge.s32.totalorder %s1142_s17, 1 }
   0x8   : > { %p174_p1 = scmp.lt.s32.totalorder %s1142_s17, 4  ;;  %p941_p2 = scmp.eq.s32.totalorder %s1198_s21, 0 }
   0x9   : > { %s1144_s24 = smov [#allocation8]   ;;  %s1145_s27 = smov 128  }
   0xa   : > { %p1204_p3 = pnand %p746_p0, %p174_p1  ;;  %s201_s25 = sshll.u32 %s1144_s24, 4  ;;  %s202_s25 = int_to_ptr.vmem [resolvable:$true] %s201_s25 }
   0xb   : > { %s1146_s28 = smov 8   ;;  %s40_s29 = sadd.s32 1, %s1138_s16 }
   0xc   : > { %p926_p4 = pneg %p1204_p3  ;;  %p42_p6 = scmp.ge.s32.totalorder %s40_s29, 3 }
   0xd   : > { %s185_s6 = sshll.u32 %s1355_s0, 4  ;;  %s1147_s7 = smov [#allocation3]   ;;  %s186_s6 = int_to_ptr.hbm [resolvable:$true] %s185_s6 }
   0xe   : > { %p1212_p5 = pnand %p941_p2, %p926_p4  ;;  %s1365_s29 = smov (%p42_p6, %s40_s29), 0 }
   0xf   : > { %s187_s8 = sshll.u32 %s1147_s7, 4  ;;  %s1148_s9 = smov 64   ;;  %s188_s8 = int_to_ptr.vmem [resolvable:$true] %s187_s8 }
  0x10   : > { %932 = dma.hbm_to_vmem [thread:$0]  (!%p1212_p5), %s200_s20, 2048, %s202_s25, [#allocation7], %s1145_s27, %s1145_s27, %s1146_s28  }
  0x11   : > { %s1149_s10 = smov 4   ;;  %p943_p7 = scmp.lt.s32.totalorder %s1142_s17, 3 }
  0x12   : > { %929 = dma.hbm_to_vmem [thread:$0]  (!%p1212_p5), %s186_s6, 1024, %s188_s8, [#allocation4], %s1148_s9, %s1148_s9, %s1149_s10  }
  0x13   : > { %p944_p8 = scmp.eq.s32.totalorder %s1142_s17, 0  ;;  %s218_s11 = sand.u32 1, %s1142_s17  }
  0x14   : > { %s233_s14 = sshll.u32 %s1356_s1, 4  ;;  %s1150_s18 = smov [#allocation6]   ;;  %s234_s14 = int_to_ptr.hbm [resolvable:$true] %s233_s14 }
  0x15   : > { %p934_p9 = pnand %p944_p8, %p943_p7  ;;  %s235_s19 = sshll.u32 %s1150_s18, 4  ;;  %s236_s19 = int_to_ptr.vmem [resolvable:$true] %s235_s19 }
  0x16   : > { %s219_s20 = scalar_lea.sflag [#allocation7], %s218_s11  ;;  %247 = sbr.rel (%p1204_p3) target bundleno = 474 (0x1da), region = 36 }
  0x17   : > { %936 = dma.hbm_to_vmem [thread:$0]  (!%p934_p9), %s234_s14, 2048, %s236_s19, %s219_s20, %s1145_s27, %s1145_s27, %s1146_s28  }
  0x1b   : > { %1117 = dma.done.wait (%p941_p2), [#allocation4], 1024  }
  0x1c   : > { %1119 = vsyncadd (%p941_p2), [#allocation4], 4294966272  ;;  %s254_s24 = sand.u32 1, %s1198_s21  }
  0x1d   : > { %s255_s25 = scalar_lea.sflag [#allocation7], %s254_s24 }
  0x1e   : > { %1121 = dma.done.wait (%p941_p2), %s255_s25, 2048  }
  0x1f   : > { %1123 = vsyncadd (%p941_p2), %s255_s25, 4294965248 }
  0x20   : > { %1125 = dma.done.wait (%p941_p2), [#allocation7], 2048  }
  0x21   : > { %1127 = vsyncadd (%p941_p2), [#allocation7], 4294965248  ;;  %p298_p10 = scmp.eq.s32.totalorder %s1134_s15, 0 }
  0x22   : > { %v305_v0 = vld [vmem:[#allocation6] sm:$0xff] (%p298_p10)  ;;  %v306_v1 = vld [vmem:[#allocation6 + $0x8] sm:$0xff] (%p298_p10)  ;;  %v307_v2 = vld [vmem:[#allocation6 + $0x10] sm:$0xff] (%p298_p10) }
  0x23   : > { %303 = sbr.rel (!%p298_p10) target bundleno = 51 (0x33), region = 52  ;;  %322 = vst [vmem:[#allocation2] sm:$0xff] (%p298_p10), %v305_v0  ;;  %v308_v3 = vld [vmem:[#allocation6 + $0x18] sm:$0xff] (%p298_p10)  ;;  %v309_v4 = vld [vmem:[#allocation6 + $0x20] sm:$0xff] (%p298_p10)  ;;  %v310_v5 = vld [vmem:[#allocation6 + $0x28] sm:$0xff] (%p298_p10) }
  0x24   : > { %323 = vst [vmem:[#allocation2 + $0x8] sm:$0xff] (%p298_p10), %v306_v1  ;;  %v311_v6 = vld [vmem:[#allocation6 + $0x30] sm:$0xff] (%p298_p10)  ;;  %v312_v7 = vld [vmem:[#allocation6 + $0x38] sm:$0xff] (%p298_p10)  ;;  %v313_v8 = vld [vmem:[#allocation6 + $0x40] sm:$0xff] (%p298_p10) }
  0x25   : > { %324 = vst [vmem:[#allocation2 + $0x10] sm:$0xff] (%p298_p10), %v307_v2  ;;  %v314_v9 = vld [vmem:[#allocation6 + $0x48] sm:$0xff] (%p298_p10)  ;;  %v315_v10 = vld [vmem:[#allocation6 + $0x50] sm:$0xff] (%p298_p10)  ;;  %v316_v11 = vld [vmem:[#allocation6 + $0x58] sm:$0xff] (%p298_p10) }
  0x26   : > { %325 = vst [vmem:[#allocation2 + $0x18] sm:$0xff] (%p298_p10), %v308_v3  ;;  %v317_v12 = vld [vmem:[#allocation6 + $0x60] sm:$0xff] (%p298_p10)  ;;  %v318_v13 = vld [vmem:[#allocation6 + $0x68] sm:$0xff] (%p298_p10)  ;;  %v319_v14 = vld [vmem:[#allocation6 + $0x70] sm:$0xff] (%p298_p10) }
  0x27   : > { %326 = vst [vmem:[#allocation2 + $0x20] sm:$0xff] (%p298_p10), %v309_v4  ;;  %v320_v15 = vld [vmem:[#allocation6 + $0x78] sm:$0xff] (%p298_p10) }
  0x28   : > { %327 = vst [vmem:[#allocation2 + $0x28] sm:$0xff] %v310_v5 }
  0x29   : > { %328 = vst [vmem:[#allocation2 + $0x30] sm:$0xff] %v311_v6 }
  0x2a   : > { %329 = vst [vmem:[#allocation2 + $0x38] sm:$0xff] %v312_v7 }
  0x2b   : > { %330 = vst [vmem:[#allocation2 + $0x40] sm:$0xff] %v313_v8 }
  0x2c   : > { %331 = vst [vmem:[#allocation2 + $0x48] sm:$0xff] %v314_v9 }
  0x2d   : > { %332 = vst [vmem:[#allocation2 + $0x50] sm:$0xff] %v315_v10 }
  0x2e   : > { %333 = vst [vmem:[#allocation2 + $0x58] sm:$0xff] %v316_v11 }
  0x2f   : > { %334 = vst [vmem:[#allocation2 + $0x60] sm:$0xff] %v317_v12 }
  0x30   : > { %335 = vst [vmem:[#allocation2 + $0x68] sm:$0xff] %v318_v13 }
  0x31   : > { %336 = vst [vmem:[#allocation2 + $0x70] sm:$0xff] %v319_v14 }
  0x32   : > { %337 = vst [vmem:[#allocation2 + $0x78] sm:$0xff] %v320_v15 }
  0x33 PF: > { %p354_p11 = scmp.lt.s32.totalorder %s1134_s15, 0  ;;  %s355_s23 = ssub.s32 0, %s1134_s15  ;;  %v810_v30 = vld [vmem:[#allocation3 + $0x20] sm:$0xff]   ;;  %v812_v31 = vld [vmem:[#allocation3 + $0x30] sm:$0xff]   ;;  %v811_v44 = vld [vmem:[#allocation3 + $0x28] sm:$0xff]  }
  0x34   : > { %s757_s26 = smin.u32 %s1134_s15, %s355_s23  ;;  %v776_v33 = vld [vmem:[#allocation3] sm:$0xff]   ;;  %v808_v34 = vld [vmem:[#allocation3 + $0x10] sm:$0xff]   ;;  %v793_v36 = vunpack.c.l.bf16 %v810_v30  ;;  %v801_v37 = vunpack.c.l.bf16 %v812_v31  ;;  %v794_v40 = vunpack.c.h.bf16 %v810_v30  ;;  %v802_v41 = vunpack.c.h.bf16 %v812_v31  ;;  %v813_v45 = vld [vmem:[#allocation3 + $0x38] sm:$0xff]   ;;  %p761_p13 = scmp.ge.s32.totalorder %s1134_s15, 2 }
  0x35   : > { %s357_s27 = sand.u32 1, %s757_s26   ;;  %v777_v38 = vunpack.c.l.bf16 %v776_v33  ;;  %v785_v39 = vunpack.c.l.bf16 %v808_v34  ;;  %v778_v42 = vunpack.c.h.bf16 %v776_v33  ;;  %v786_v43 = vunpack.c.h.bf16 %v808_v34  ;;  %v807_v46 = vld [vmem:[#allocation3 + $0x8] sm:$0xff]   ;;  %v809_v47 = vld [vmem:[#allocation3 + $0x18] sm:$0xff]   ;;  %s471_s7 = sadd.s32 (!%p761_p13), 1, %s1134_s15 }
  0x36   : > { %s358_s28 = ssub.s32 0, %s357_s27  ;;  %v797_v48 = vunpack.c.l.bf16 %v811_v44  ;;  %v805_v49 = vunpack.c.l.bf16 %v813_v45  ;;  %v781_v50 = vunpack.c.l.bf16 %v807_v46  ;;  %v789_v51 = vunpack.c.l.bf16 %v809_v47  ;;  %p472_p0 = scmp.lt.s32.totalorder (!%p761_p13), %s471_s7, 0 }
  0x37   : > { %s1367_s28 = smov (!%p354_p11, %s358_s28), %s357_s27  ;;  %v798_v52 = vunpack.c.h.bf16 %v811_v44  ;;  %v806_v53 = vunpack.c.h.bf16 %v813_v45  ;;  %v782_v54 = vunpack.c.h.bf16 %v807_v46  ;;  %v790_v55 = vunpack.c.h.bf16 %v809_v47  ;;  %s473_s8 = ssub.s32 (!%p761_p13), 0, %s471_s7 }
  0x38   : > { %p759_p12 = scmp.lt.s32.totalorder %s1367_s28, 0  ;;  %s364_s30 = sadd.s32 2, %s1367_s28 }
  0x39   : > { %s762_s9 = smin.u32 (!%p761_p13), %s473_s8, %s471_s7 }
  0x3a   : > { %s1369_s30 = smov (!%p759_p12, %s364_s30), %s1367_s28  ;;  %s475_s10 = sand.u32 (!%p761_p13), 1, %s762_s9  }
  0x3b   : > { %s760_s5 = sshll.u32 %s1369_s30, 7  ;;  %s476_s11 = ssub.s32 (!%p761_p13), 0, %s475_s10 }
  0x3c   : > { %s1251_s6 = scalar_lea.vmem [#allocation2], %s760_s5 }
  0x3d   : > { %v385_v16 = vld [vmem:[%s1251_s6 + $0x78] sm:$0xff]  ;;  %v384_v17 = vld [vmem:[%s1251_s6 + $0x70] sm:$0xff]  ;;  %v383_v18 = vld [vmem:[%s1251_s6 + $0x68] sm:$0xff] }
  0x3e   : > { %815 = vmatpush.msra.mxu2 %v385_v16  ;;  %816 = vmatpush.msra.mxu3 %v385_v16  ;;  %v382_v19 = vld [vmem:[%s1251_s6 + $0x60] sm:$0xff]  ;;  %v381_v20 = vld [vmem:[%s1251_s6 + $0x58] sm:$0xff]  ;;  %v380_v21 = vld [vmem:[%s1251_s6 + $0x50] sm:$0xff] }
  0x3f   : > { %402 = vmatpush.msra.mxu0 %v385_v16  ;;  %814 = vmatpush.msra.mxu1 %v385_v16  ;;  %v379_v22 = vld [vmem:[%s1251_s6 + $0x48] sm:$0xff]  ;;  %v378_v23 = vld [vmem:[%s1251_s6 + $0x40] sm:$0xff]  ;;  %v377_v24 = vld [vmem:[%s1251_s6 + $0x38] sm:$0xff] }
  0x40   : > { %818 = vmatpush.msra.mxu2 %v384_v17  ;;  %819 = vmatpush.msra.mxu3 %v384_v17  ;;  %v376_v25 = vld [vmem:[%s1251_s6 + $0x30] sm:$0xff]  ;;  %v375_v26 = vld [vmem:[%s1251_s6 + $0x28] sm:$0xff]  ;;  %v374_v27 = vld [vmem:[%s1251_s6 + $0x20] sm:$0xff] }
  0x41   : > { %403 = vmatpush.msra.mxu0 %v384_v17  ;;  %817 = vmatpush.msra.mxu1 %v384_v17  ;;  %v373_v28 = vld [vmem:[%s1251_s6 + $0x18] sm:$0xff]  ;;  %v372_v29 = vld [vmem:[%s1251_s6 + $0x10] sm:$0xff]  ;;  %v371_v32 = vld [vmem:[%s1251_s6 + $0x8] sm:$0xff] }
  0x42   : > { %821 = vmatpush.msra.mxu2 %v383_v18  ;;  %822 = vmatpush.msra.mxu3 %v383_v18  ;;  %v370_v35 = vld [vmem:[%s1251_s6] sm:$0xff] }
  0x43   : > { %404 = vmatpush.msra.mxu0 %v383_v18  ;;  %820 = vmatpush.msra.mxu1 %v383_v18 }
  0x44   : > { %824 = vmatpush.msra.mxu2 %v382_v19  ;;  %825 = vmatpush.msra.mxu3 %v382_v19 }
  0x45   : > { %405 = vmatpush.msra.mxu0 %v382_v19  ;;  %823 = vmatpush.msra.mxu1 %v382_v19 }
  0x46   : > { %827 = vmatpush.msra.mxu2 %v381_v20  ;;  %828 = vmatpush.msra.mxu3 %v381_v20 }
  0x47   : > { %406 = vmatpush.msra.mxu0 %v381_v20  ;;  %826 = vmatpush.msra.mxu1 %v381_v20 }
  0x48   : > { %830 = vmatpush.msra.mxu2 %v380_v21  ;;  %831 = vmatpush.msra.mxu3 %v380_v21 }
  0x49   : > { %407 = vmatpush.msra.mxu0 %v380_v21  ;;  %829 = vmatpush.msra.mxu1 %v380_v21 }
  0x4a   : > { %833 = vmatpush.msra.mxu2 %v379_v22  ;;  %834 = vmatpush.msra.mxu3 %v379_v22 }
  0x4b   : > { %408 = vmatpush.msra.mxu0 %v379_v22  ;;  %832 = vmatpush.msra.mxu1 %v379_v22 }
  0x4c   : > { %836 = vmatpush.msra.mxu2 %v378_v23  ;;  %837 = vmatpush.msra.mxu3 %v378_v23 }
  0x4d   : > { %409 = vmatpush.msra.mxu0 %v378_v23  ;;  %835 = vmatpush.msra.mxu1 %v378_v23 }
  0x4e   : > { %839 = vmatpush.msra.mxu2 %v377_v24  ;;  %840 = vmatpush.msra.mxu3 %v377_v24 }
  0x4f   : > { %410 = vmatpush.msra.mxu0 %v377_v24  ;;  %838 = vmatpush.msra.mxu1 %v377_v24 }
  0x50   : > { %842 = vmatpush.msra.mxu2 %v376_v25  ;;  %843 = vmatpush.msra.mxu3 %v376_v25 }
  0x51   : > { %411 = vmatpush.msra.mxu0 %v376_v25  ;;  %841 = vmatpush.msra.mxu1 %v376_v25 }
  0x52   : > { %845 = vmatpush.msra.mxu2 %v375_v26  ;;  %846 = vmatpush.msra.mxu3 %v375_v26 }
  0x53   : > { %412 = vmatpush.msra.mxu0 %v375_v26  ;;  %844 = vmatpush.msra.mxu1 %v375_v26 }
  0x54   : > { %848 = vmatpush.msra.mxu2 %v374_v27  ;;  %849 = vmatpush.msra.mxu3 %v374_v27 }
  0x55   : > { %413 = vmatpush.msra.mxu0 %v374_v27  ;;  %847 = vmatpush.msra.mxu1 %v374_v27 }
  0x56   : > { %851 = vmatpush.msra.mxu2 %v373_v28  ;;  %852 = vmatpush.msra.mxu3 %v373_v28 }
  0x57   : > { %414 = vmatpush.msra.mxu0 %v373_v28  ;;  %850 = vmatpush.msra.mxu1 %v373_v28 }
  0x58   : > { %854 = vmatpush.msra.mxu2 %v372_v29  ;;  %855 = vmatpush.msra.mxu3 %v372_v29 }
  0x59   : > { %415 = vmatpush.msra.mxu0 %v372_v29  ;;  %853 = vmatpush.msra.mxu1 %v372_v29 }
  0x5a   : > { %857 = vmatpush.msra.mxu2 %v371_v32  ;;  %858 = vmatpush.msra.mxu3 %v371_v32 }
  0x5b   : > { %416 = vmatpush.msra.mxu0 %v371_v32  ;;  %856 = vmatpush.msra.mxu1 %v371_v32 }
  0x5c   : > { %860 = vmatpush.msra.mxu2 %v370_v35  ;;  %861 = vmatpush.msra.mxu3 %v370_v35 }
  0x5d   : > { %442 = vmatmul.f32.vlgmr.msra.gmra.mxu2 %v793_v36  ;;  %454 = vmatmul.f32.vlgmr.msra.gmra.mxu3 %v801_v37 }
  0x5e   : > { %417 = vmatpush.msra.mxu0 %v370_v35  ;;  %859 = vmatpush.msra.mxu1 %v370_v35 }
  0x5f   : > { %418 = vmatmul.f32.vlgmr.msra.gmra.mxu0 %v777_v38  ;;  %430 = vmatmul.f32.vlgmr.msra.gmra.mxu1 %v785_v39 }
  0x65   : > { %445 = vmatmul.f32.gmra.mxu2 %v794_v40  ;;  %457 = vmatmul.f32.gmra.mxu3 %v802_v41 }
  0x67   : > { %421 = vmatmul.f32.gmra.mxu0 %v778_v42  ;;  %433 = vmatmul.f32.gmra.mxu1 %v786_v43 }
  0x6d   : > { %448 = vmatmul.f32.gmra.mxu2 %v797_v48  ;;  %460 = vmatmul.f32.gmra.mxu3 %v805_v49 }
  0x6f   : > { %424 = vmatmul.f32.gmra.mxu0 %v781_v50  ;;  %436 = vmatmul.f32.gmra.mxu1 %v789_v51 }
  0x75   : > { %451 = vmatmul.f32.gmra.mxu2 %v798_v52  ;;  %463 = vmatmul.f32.gmra.mxu3 %v806_v53 }
  0x77   : > { %427 = vmatmul.f32.gmra.mxu0 %v782_v54  ;;  %439 = vmatmul.f32.gmra.mxu1 %v790_v55 }
  0xdc   : > { %v1269_v56 = vpop.f32.mrf.mxu0  ;;  %v1271_v57 = vpop.f32.mrf.mxu1 }
  0xe0   : > { %v1273_v58 = vpop.f32.mrf.mxu2  ;;  %v1275_v59 = vpop.f32.mrf.mxu3 }
  0xe4   : > { %v1277_v60 = vpop.f32.mrf.mxu0  ;;  %v1279_v61 = vpop.f32.mrf.mxu1 }
  0xe8   : > { %v1281_v62 = vpop.f32.mrf.mxu2  ;;  %v1283_v63 = vpop.f32.mrf.mxu3 }
  0xec   : > { %v1285_v0 = vpop.f32.mrf.mxu0  ;;  %v1287_v1 = vpop.f32.mrf.mxu1 }
  0xf0   : > { %v1289_v2 = vpop.f32.mrf.mxu2  ;;  %v1291_v3 = vpop.f32.mrf.mxu3 }
  0xf4   : > { %v1293_v4 = vpop.f32.mrf.mxu0  ;;  %v1295_v5 = vpop.f32.mrf.mxu1  ;;  %470 = sbr.rel (%p761_p13) target bundleno = 271 (0x10f), region = 56 }
  0xf8   : > { %v1297_v6 = vpop.f32.mrf.mxu2  ;;  %v1299_v7 = vpop.f32.mrf.mxu3 }
  0xf9   : > { %s1371_s11 = smov (!%p472_p0, %s476_s11), %s475_s10 }
  0xfa   : > { %p764_p1 = scmp.lt.s32.totalorder %s1371_s11, 0  ;;  %s482_s12 = sadd.s32 2, %s1371_s11 }
  0xfc   : > { %s1373_s12 = smov (!%p764_p1, %s482_s12), %s1371_s11 }
  0xfd   : > { %s765_s13 = sshll.u32 %s1373_s12, 7 }
  0xfe   : > { %s487_s14 = scalar_lea.vmem [#allocation2], %s765_s13 }
  0xff   : > { %488 = vst [vmem:[%s487_s14] sm:$0xff] %v1269_v56 }
 0x100   : > { %489 = vst [vmem:[%s487_s14 + $0x8] sm:$0xff] %v1277_v60 }
 0x101   : > { %490 = vst [vmem:[%s487_s14 + $0x10] sm:$0xff] %v1285_v0 }
 0x102   : > { %491 = vst [vmem:[%s487_s14 + $0x18] sm:$0xff] %v1293_v4 }
 0x103   : > { %492 = vst [vmem:[%s487_s14 + $0x20] sm:$0xff] %v1271_v57 }
 0x104   : > { %493 = vst [vmem:[%s487_s14 + $0x28] sm:$0xff] %v1279_v61 }
 0x105   : > { %494 = vst [vmem:[%s487_s14 + $0x30] sm:$0xff] %v1287_v1 }
 0x106   : > { %495 = vst [vmem:[%s487_s14 + $0x38] sm:$0xff] %v1295_v5 }
 0x107   : > { %496 = vst [vmem:[%s487_s14 + $0x40] sm:$0xff] %v1273_v58 }
 0x108   : > { %497 = vst [vmem:[%s487_s14 + $0x48] sm:$0xff] %v1281_v62 }
 0x109   : > { %498 = vst [vmem:[%s487_s14 + $0x50] sm:$0xff] %v1289_v2 }
 0x10a   : > { %499 = vst [vmem:[%s487_s14 + $0x58] sm:$0xff] %v1297_v6 }
 0x10b   : > { %500 = vst [vmem:[%s487_s14 + $0x60] sm:$0xff] %v1275_v59 }
 0x10c   : > { %501 = vst [vmem:[%s487_s14 + $0x68] sm:$0xff] %v1283_v63 }
 0x10d   : > { %502 = vst [vmem:[%s487_s14 + $0x70] sm:$0xff] %v1291_v3 }
 0x10e   : > { %503 = vst [vmem:[%s487_s14 + $0x78] sm:$0xff] %v1299_v7 }
 0x10f PF: > { %p766_p2 = scmp.ne.s32.totalorder %s1134_s15, 2 }
 0x111   : > { %507 = sbr.rel (%p766_p2) target bundleno = 470 (0x1d6), region = 60 }
 0x116   : > { %v523_v8 = vld [vmem:[#allocation8 + $0x78] sm:$0xff]  ;;  %v522_v9 = vld [vmem:[#allocation8 + $0x70] sm:$0xff]  ;;  %v521_v10 = vld [vmem:[#allocation8 + $0x68] sm:$0xff] }
 0x117   : > { %863 = vmatpush.msra.mxu2 %v523_v8  ;;  %864 = vmatpush.msra.mxu3 %v523_v8  ;;  %v520_v11 = vld [vmem:[#allocation8 + $0x60] sm:$0xff]  ;;  %v519_v12 = vld [vmem:[#allocation8 + $0x58] sm:$0xff]  ;;  %v518_v13 = vld [vmem:[#allocation8 + $0x50] sm:$0xff] }
 0x118   : > { %528 = vmatpush.msra.mxu0 %v523_v8  ;;  %862 = vmatpush.msra.mxu1 %v523_v8  ;;  %v517_v14 = vld [vmem:[#allocation8 + $0x48] sm:$0xff]  ;;  %v516_v15 = vld [vmem:[#allocation8 + $0x40] sm:$0xff]  ;;  %v515_v16 = vld [vmem:[#allocation8 + $0x38] sm:$0xff] }
 0x119   : > { %866 = vmatpush.msra.mxu2 %v522_v9  ;;  %867 = vmatpush.msra.mxu3 %v522_v9  ;;  %v514_v17 = vld [vmem:[#allocation8 + $0x30] sm:$0xff]  ;;  %v513_v18 = vld [vmem:[#allocation8 + $0x28] sm:$0xff]  ;;  %v512_v19 = vld [vmem:[#allocation8 + $0x20] sm:$0xff] }
 0x11a   : > { %529 = vmatpush.msra.mxu0 %v522_v9  ;;  %865 = vmatpush.msra.mxu1 %v522_v9  ;;  %v511_v20 = vld [vmem:[#allocation8 + $0x18] sm:$0xff]  ;;  %v510_v21 = vld [vmem:[#allocation8 + $0x10] sm:$0xff]  ;;  %v509_v22 = vld [vmem:[#allocation8 + $0x8] sm:$0xff] }
 0x11b   : > { %869 = vmatpush.msra.mxu2 %v521_v10  ;;  %870 = vmatpush.msra.mxu3 %v521_v10  ;;  %v508_v23 = vld [vmem:[#allocation8] sm:$0xff] }
 0x11c   : > { %530 = vmatpush.msra.mxu0 %v521_v10  ;;  %868 = vmatpush.msra.mxu1 %v521_v10  ;;  %v985_v24 = vld [vmem:[%s1358_s3] ss:$0 sm:$0xff] }
 0x11d   : > { %872 = vmatpush.msra.mxu2 %v520_v11  ;;  %873 = vmatpush.msra.mxu3 %v520_v11 }
 0x11e   : > { %531 = vmatpush.msra.mxu0 %v520_v11  ;;  %871 = vmatpush.msra.mxu1 %v520_v11 }
 0x11f   : > { %875 = vmatpush.msra.mxu2 %v519_v12  ;;  %876 = vmatpush.msra.mxu3 %v519_v12 }
 0x120   : > { %532 = vmatpush.msra.mxu0 %v519_v12  ;;  %874 = vmatpush.msra.mxu1 %v519_v12 }
 0x121   : > { %878 = vmatpush.msra.mxu2 %v518_v13  ;;  %879 = vmatpush.msra.mxu3 %v518_v13 }
 0x122   : > { %533 = vmatpush.msra.mxu0 %v518_v13  ;;  %877 = vmatpush.msra.mxu1 %v518_v13 }
 0x123   : > { %881 = vmatpush.msra.mxu2 %v517_v14  ;;  %882 = vmatpush.msra.mxu3 %v517_v14 }
 0x124   : > { %534 = vmatpush.msra.mxu0 %v517_v14  ;;  %880 = vmatpush.msra.mxu1 %v517_v14 }
 0x125   : > { %884 = vmatpush.msra.mxu2 %v516_v15  ;;  %885 = vmatpush.msra.mxu3 %v516_v15 }
 0x126   : > { %535 = vmatpush.msra.mxu0 %v516_v15  ;;  %883 = vmatpush.msra.mxu1 %v516_v15 }
 0x127   : > { %887 = vmatpush.msra.mxu2 %v515_v16  ;;  %888 = vmatpush.msra.mxu3 %v515_v16 }
 0x128   : > { %536 = vmatpush.msra.mxu0 %v515_v16  ;;  %886 = vmatpush.msra.mxu1 %v515_v16 }
 0x129   : > { %890 = vmatpush.msra.mxu2 %v514_v17  ;;  %891 = vmatpush.msra.mxu3 %v514_v17 }
 0x12a   : > { %537 = vmatpush.msra.mxu0 %v514_v17  ;;  %889 = vmatpush.msra.mxu1 %v514_v17 }
 0x12b   : > { %893 = vmatpush.msra.mxu2 %v513_v18  ;;  %894 = vmatpush.msra.mxu3 %v513_v18 }
 0x12c   : > { %538 = vmatpush.msra.mxu0 %v513_v18  ;;  %892 = vmatpush.msra.mxu1 %v513_v18 }
 0x12d   : > { %896 = vmatpush.msra.mxu2 %v512_v19  ;;  %897 = vmatpush.msra.mxu3 %v512_v19 }
 0x12e   : > { %539 = vmatpush.msra.mxu0 %v512_v19  ;;  %895 = vmatpush.msra.mxu1 %v512_v19 }
 0x12f   : > { %899 = vmatpush.msra.mxu2 %v511_v20  ;;  %900 = vmatpush.msra.mxu3 %v511_v20 }
 0x130   : > { %540 = vmatpush.msra.mxu0 %v511_v20  ;;  %898 = vmatpush.msra.mxu1 %v511_v20 }
 0x131   : > { %902 = vmatpush.msra.mxu2 %v510_v21  ;;  %903 = vmatpush.msra.mxu3 %v510_v21 }
 0x132   : > { %541 = vmatpush.msra.mxu0 %v510_v21  ;;  %901 = vmatpush.msra.mxu1 %v510_v21 }
 0x133   : > { %905 = vmatpush.msra.mxu2 %v509_v22  ;;  %906 = vmatpush.msra.mxu3 %v509_v22 }
 0x134   : > { %542 = vmatpush.msra.mxu0 %v509_v22  ;;  %904 = vmatpush.msra.mxu1 %v509_v22 }
 0x135   : > { %908 = vmatpush.msra.mxu2 %v508_v23  ;;  %909 = vmatpush.msra.mxu3 %v508_v23 }
 0x136   : > { %568 = vmatmul.f32.vlgmr.msra.gmra.mxu2 %v1273_v58  ;;  %580 = vmatmul.f32.vlgmr.msra.gmra.mxu3 %v1275_v59 }
 0x137   : > { %543 = vmatpush.msra.mxu0 %v508_v23  ;;  %907 = vmatpush.msra.mxu1 %v508_v23 }
 0x138   : > { %544 = vmatmul.f32.vlgmr.msra.gmra.mxu0 %v1269_v56  ;;  %556 = vmatmul.f32.vlgmr.msra.gmra.mxu1 %v1271_v57 }
 0x13e   : > { %571 = vmatmul.f32.gmra.mxu2 %v1281_v62  ;;  %583 = vmatmul.f32.gmra.mxu3 %v1283_v63 }
 0x140   : > { %547 = vmatmul.f32.gmra.mxu0 %v1277_v60  ;;  %559 = vmatmul.f32.gmra.mxu1 %v1279_v61 }
 0x146   : > { %574 = vmatmul.f32.gmra.mxu2 %v1289_v2  ;;  %586 = vmatmul.f32.gmra.mxu3 %v1291_v3 }
 0x148   : > { %550 = vmatmul.f32.gmra.mxu0 %v1285_v0  ;;  %562 = vmatmul.f32.gmra.mxu1 %v1287_v1 }
 0x14e   : > { %577 = vmatmul.f32.gmra.mxu2 %v1297_v6  ;;  %589 = vmatmul.f32.gmra.mxu3 %v1299_v7 }
 0x150   : > { %553 = vmatmul.f32.gmra.mxu0 %v1293_v4  ;;  %565 = vmatmul.f32.gmra.mxu1 %v1295_v5 }
 0x1b5   : > { %v545_v25 = vpop.f32.mrf.mxu0  ;;  %v557_v26 = vpop.f32.mrf.mxu1 }
 0x1b6   : > { %v546_v27 = vadd.f32 %v985_v24, %v545_v25  ;;  %v558_v28 = vadd.f32 %v985_v24, %v557_v26 }
 0x1b8   : > { %593 = vst [vmem:[#allocation9] sm:$0xff] %v546_v27 }
 0x1b9   : > { %597 = vst [vmem:[#allocation9 + $0x20] sm:$0xff] %v558_v28  ;;  %v569_v29 = vpop.f32.mrf.mxu2  ;;  %v581_v30 = vpop.f32.mrf.mxu3 }
 0x1ba   : > { %v570_v31 = vadd.f32 %v985_v24, %v569_v29  ;;  %v582_v32 = vadd.f32 %v985_v24, %v581_v30 }
 0x1bc   : > { %601 = vst [vmem:[#allocation9 + $0x40] sm:$0xff] %v570_v31 }
 0x1bd   : > { %605 = vst [vmem:[#allocation9 + $0x60] sm:$0xff] %v582_v32  ;;  %v548_v33 = vpop.f32.mrf.mxu0  ;;  %v560_v34 = vpop.f32.mrf.mxu1 }
 0x1be   : > { %v549_v35 = vadd.f32 %v985_v24, %v548_v33  ;;  %v561_v36 = vadd.f32 %v985_v24, %v560_v34 }
 0x1c0   : > { %594 = vst [vmem:[#allocation9 + $0x8] sm:$0xff] %v549_v35 }
 0x1c1   : > { %598 = vst [vmem:[#allocation9 + $0x28] sm:$0xff] %v561_v36  ;;  %v572_v37 = vpop.f32.mrf.mxu2  ;;  %v584_v38 = vpop.f32.mrf.mxu3 }
 0x1c2   : > { %v573_v39 = vadd.f32 %v985_v24, %v572_v37  ;;  %v585_v40 = vadd.f32 %v985_v24, %v584_v38 }
 0x1c4   : > { %602 = vst [vmem:[#allocation9 + $0x48] sm:$0xff] %v573_v39 }
 0x1c5   : > { %606 = vst [vmem:[#allocation9 + $0x68] sm:$0xff] %v585_v40  ;;  %v551_v41 = vpop.f32.mrf.mxu0  ;;  %v563_v42 = vpop.f32.mrf.mxu1 }
 0x1c6   : > { %v552_v43 = vadd.f32 %v985_v24, %v551_v41  ;;  %v564_v44 = vadd.f32 %v985_v24, %v563_v42 }
 0x1c8   : > { %595 = vst [vmem:[#allocation9 + $0x10] sm:$0xff] %v552_v43 }
 0x1c9   : > { %599 = vst [vmem:[#allocation9 + $0x30] sm:$0xff] %v564_v44  ;;  %v575_v45 = vpop.f32.mrf.mxu2  ;;  %v587_v46 = vpop.f32.mrf.mxu3 }
 0x1ca   : > { %v576_v47 = vadd.f32 %v985_v24, %v575_v45  ;;  %v588_v48 = vadd.f32 %v985_v24, %v587_v46 }
 0x1cc   : > { %603 = vst [vmem:[#allocation9 + $0x50] sm:$0xff] %v576_v47 }
 0x1cd   : > { %607 = vst [vmem:[#allocation9 + $0x70] sm:$0xff] %v588_v48  ;;  %v554_v49 = vpop.f32.mrf.mxu0  ;;  %v566_v50 = vpop.f32.mrf.mxu1 }
 0x1ce   : > { %v555_v51 = vadd.f32 %v985_v24, %v554_v49  ;;  %v567_v52 = vadd.f32 %v985_v24, %v566_v50 }
 0x1d0   : > { %596 = vst [vmem:[#allocation9 + $0x18] sm:$0xff] %v555_v51 }
 0x1d1   : > { %600 = vst [vmem:[#allocation9 + $0x38] sm:$0xff] %v567_v52  ;;  %v578_v53 = vpop.f32.mrf.mxu2  ;;  %v590_v54 = vpop.f32.mrf.mxu3 }
 0x1d2   : > { %v579_v55 = vadd.f32 %v985_v24, %v578_v53  ;;  %v591_v56 = vadd.f32 %v985_v24, %v590_v54 }
 0x1d4   : > { %604 = vst [vmem:[#allocation9 + $0x58] sm:$0xff] %v579_v55 }
 0x1d5   : > { %608 = vst [vmem:[#allocation9 + $0x78] sm:$0xff] %v591_v56 }
 0x1d6 PF: > { %p948_p3 = scmp.eq.s32.totalorder %s1198_s21, 2  ;;  %s626_s24 = sshll.u32 %s1359_s4, 4  ;;  %s627_s24 = int_to_ptr.hbm [resolvable:$true] %s626_s24 }
 0x1d7   : > { %s1151_s25 = smov [#allocation9]   ;;  %s1152_s26 = smov 128  }
 0x1d8   : > { %s624_s23 = sshll.u32 %s1151_s25, 4  ;;  %s1153_s27 = smov 8   ;;  %s625_s23 = int_to_ptr.vmem [resolvable:$true] %s624_s23 }
 0x1d9   : > { %923 = dma.vmem_to_hbm [thread:$0]  (%p948_p3), %s625_s23, 2048, %s627_s24, [#allocation5], %s1152_s26, %s1152_s26, %s1153_s27  }
 0x1da PF: > { %p949_p4 = scmp.ge.s32.totalorder %s1142_s17, 2  ;;  %p950_p5 = scmp.eq.s32.totalorder %s743_s22, 2 }
 0x1dc   : > { %p938_p6 = pnand %p950_p5, %p949_p4 }
 0x1de   : > { %p939_p7 = pneg %p938_p6 }
 0x1e0   : > { %1129 = dma.done.wait (%p939_p7), [#allocation5], 2048  }
 0x1e1   : > { %1131 = vsyncadd (%p939_p7), [#allocation5], 4294965248  ;;  %s21_s17 = sadd.s32 1, %s1142_s17   ;;  %s1362_s15 = smov %s1138_s16 }
 0x1e2   : > { %p18_p8 = scmp.ge.s32.totalorder %s21_s17, 5   ;;  %s1363_s16 = smov %s1365_s29 }
 0x1e4   :  { %20 = sbr.rel (!%p18_p8) target bundleno = 6 (0x6), region = 105 }
 0x1e9   :  { %648 = vsyncpa [#allocation4], 1 }
 0x1ea   :  { %650 = vsyncpa [#allocation4 + $0x1], 1 }
 0x1eb   :  { %651 = vsyncpa [#allocation7], 1 }
 0x1ec   :  { %653 = vsyncpa [#allocation7 + $0x1], 1 }
 0x1ed   :  { %654 = vsyncpa [#allocation5], 1 }
 0x1ee   :  { %656 = vsyncpa [#allocation5 + $0x1], 1 }

</bundles_post_ra>
